<compile_context>
chip_gen: v5e
topology: v5e:2x2
jax: 0.10.0
libtpu: 0.0.40
codegen_flags: <defaults>
</compile_context>

<pallas_src>
import jax
import jax.numpy as jnp
from jax.experimental import pallas as pl
from jax.experimental.pallas import tpu as pltpu


def _hbc_ansatz_kernel(xT_ref, w1T_ref, b1T_ref, w2T_ref, b2T_ref, w3_ref,
                       b3_ref, dl_ref, o_ref):
    xT = xT_ref[...]                                   # (D_in, TILE_N)
    d_in = xT_ref.shape[0]

    # ---- layer 1: tiny-K (=2) contraction on the VPU, not the MXU ----------
    acc = w1T_ref[:, 0:1] * xT[0:1, :]                 # (H,1)*(1,T) -> (H,T)
    for k in range(1, d_in):                           # static unroll, D_in=2
        acc = acc + w1T_ref[:, k:k + 1] * xT[k:k + 1, :]
    h1 = jnp.tanh(acc + b1T_ref[...])                  # (H, TILE_N), full-lane

    # ---- layer 2: (H,H) @ (H,TILE_N) on the MXU, f32 accumulation ----------
    h2 = jnp.tanh(
        jnp.dot(w2T_ref[...], h1, preferred_element_type=jnp.float32)
        + b2T_ref[...])                                # (H, TILE_N)
    # TODO(synk): optional bf16 tanh/matmul path on v6e/v7x (~2x EUP) if PINN
    # accuracy tolerates it; kept f32 so v5e and the f32 reference match.

    # ---- layer 3: M=1 projection as VPU multiply + sublane (XLU) reduce ----
    net = (jnp.sum(w3_ref[...] * h2, axis=0, keepdims=True)
           + b3_ref[0, 0])                             # (1, TILE_N)

    # ---- HBC ansatz: u = u_left + (0 - x_coor) * network(x) ----------------
    x_coor = xT[0:1, :]                                # (1, TILE_N)
    o_ref[...] = dl_ref[0, 0] - x_coor * net           # lane-dense store


def normalized_hbc_ansatz_1d(x, params, displacement_left, *, tile_n=2048):
    """x: (N, D_in) float32. Returns (N, 1) float32."""
    w1, b1, w2, b2, w3, b3 = params
    n, d_in = x.shape
    h = w1.shape[1]

    # Pick a lane-dense tile and pad the batch so every grid step is full.
    tile_n = max(128, min(tile_n, pl.next_power_of_2(n)))
    n_pad = pl.cdiv(n, tile_n) * tile_n

    # Wrapper-side layout plumbing: batch on the lane axis inside the kernel.
    xT = x.T                                           # (D_in, N)
    if n_pad != n:
        xT = jnp.pad(xT, ((0, 0), (0, n_pad - n)))
    w1T, b1T = w1.T, b1.reshape(h, 1)                  # (H, D_in), (H, 1)
    w2T, b2T = w2.T, b2.reshape(h, 1)                  # (H, H),    (H, 1)
    # w3 is already (H, 1); b3 / displacement_left are (1,1) scalars -> SMEM.

    const = lambda shape: pl.BlockSpec(shape, lambda i: (0, 0))
    smem = pl.BlockSpec(memory_space=pltpu.MemorySpace.SMEM)

    out = pl.pallas_call(
        _hbc_ansatz_kernel,
        out_shape=jax.ShapeDtypeStruct((1, n_pad), jnp.float32),
        grid=(n_pad // tile_n,),
        in_specs=[
            pl.BlockSpec((d_in, tile_n), lambda i: (0, i)),  # xT, lane-tiled
            const((h, d_in)),                                # w1T (resident)
            const((h, 1)),                                   # b1T
            const((h, h)),                                   # w2T
            const((h, 1)),                                   # b2T
            const((h, 1)),                                   # w3
            smem,                                            # b3 (scalar)
            smem,                                            # displacement_left
        ],
        out_specs=pl.BlockSpec((1, tile_n), lambda i: (0, i)),
        compiler_params=pltpu.CompilerParams(
            dimension_semantics=("parallel",)),
    )(xT, w1T, b1T, w2T, b2T, w3, b3, displacement_left)

    return out[:, :n].reshape(n, 1)


def _reference(x, params, displacement_left):
    w1, b1, w2, b2, w3, b3 = params
    h1 = jnp.tanh(x @ w1 + b1)
    h2 = jnp.tanh(h1 @ w2 + b2)
    net = h2 @ w3 + b3
    x_coor = x[:, 0:1]
    return displacement_left[0, 0] + (0.0 - x_coor) * net


if __name__ == "__main__":
    key = jax.random.PRNGKey(0)
    k_x, k1, k2, k3, k4, k5, k6 = jax.random.split(key, 7)

    # Small model (D_in=2, H=32) over a batch of collocation points large
    # enough to exercise lane-dense 128-multiple tiling: 4 grid steps of 512.
    N, D_IN, H = 2048, 2, 32

    # Deterministic parameter init (synthetic, not a checkpoint load).
    w1 = jax.random.normal(k1, (D_IN, H), jnp.float32) * 0.5
    b1 = jax.random.normal(k2, (1, H), jnp.float32) * 0.1
    w2 = jax.random.normal(k3, (H, H), jnp.float32) * 0.2
    b2 = jax.random.normal(k4, (1, H), jnp.float32) * 0.1
    w3 = jax.random.normal(k5, (H, 1), jnp.float32) * 0.3
    b3 = jax.random.normal(k6, (1, 1), jnp.float32) * 0.1
    params = (w1, b1, w2, b2, w3, b3)

    displacement_left = jnp.full((1, 1), 0.25, jnp.float32)

    # Input: (N, 2) — first column is the x coordinate, second a parameter.
    x = jax.random.uniform(k_x, (N, D_IN), jnp.float32)

    out = normalized_hbc_ansatz_1d(x, params, displacement_left, tile_n=512)
    out = jax.block_until_ready(out)

    ref = _reference(x, params, displacement_left)
    assert out.shape == (N, 1)
    assert jnp.allclose(out, ref, atol=1e-5, rtol=1e-5)

    # Also exercise a non-tile-multiple batch (wrapper pads + slices back).
    n_odd = 1000
    out_odd = normalized_hbc_ansatz_1d(x[:n_odd], params, displacement_left,
                                       tile_n=512)
    out_odd = jax.block_until_ready(out_odd)
    assert out_odd.shape == (n_odd, 1)
    assert jnp.allclose(out_odd, ref[:n_odd], atol=1e-5, rtol=1e-5)

    print("KERNEL_OK")
</pallas_src>

<mosaic_0001>
module attributes {stable_mosaic.version = 11 : i64} {
  func.func @_hbc_ansatz_kernel(%arg0: i32, %arg1: memref<2x512xf32, #tpu.memory_space<vmem>>, %arg2: memref<32x2xf32, #tpu.memory_space<vmem>>, %arg3: memref<32x1xf32, #tpu.memory_space<vmem>>, %arg4: memref<32x32xf32, #tpu.memory_space<vmem>>, %arg5: memref<32x1xf32, #tpu.memory_space<vmem>>, %arg6: memref<32x1xf32, #tpu.memory_space<vmem>>, %arg7: memref<1x1xf32, #tpu.memory_space<smem>>, %arg8: memref<1x1xf32, #tpu.memory_space<smem>>, %arg9: memref<1x512xf32, #tpu.memory_space<vmem>>) attributes {dimension_semantics = [#tpu.dimension_semantics<parallel>], iteration_bounds = array<i64: 4>, scalar_prefetch = 0 : i64, scratch_operands = 0 : i64, tpu.core_type = #tpu.core_type<tc>, window_params = [{transform_indices = @transform_0, window_bounds = array<i64: 2, 512>}, {pipeline_mode = #tpu.pipeline_mode<synchronous>, transform_indices = @transform_1, window_bounds = array<i64: 32, 2>}, {pipeline_mode = #tpu.pipeline_mode<synchronous>, transform_indices = @transform_2, window_bounds = array<i64: 32, 1>}, {pipeline_mode = #tpu.pipeline_mode<synchronous>, transform_indices = @transform_3, window_bounds = array<i64: 32, 32>}, {pipeline_mode = #tpu.pipeline_mode<synchronous>, transform_indices = @transform_4, window_bounds = array<i64: 32, 1>}, {pipeline_mode = #tpu.pipeline_mode<synchronous>, transform_indices = @transform_5, window_bounds = array<i64: 32, 1>}, {transform_indices = @transform_6, window_bounds = array<i64: 1, 1>}, {transform_indices = @transform_7, window_bounds = array<i64: 1, 1>}, {transform_indices = @transform_8, window_bounds = array<i64: 1, 512>}]} {
    %c0 = arith.constant 0 : index
    %c0_0 = arith.constant 0 : index
    %0 = vector.load %arg1[%c0, %c0_0] : memref<2x512xf32, #tpu.memory_space<vmem>>, vector<2x512xf32>
    %c0_1 = arith.constant 0 : index
    %c0_2 = arith.constant 0 : index
    %1 = vector.load %arg2[%c0_1, %c0_2] : memref<32x2xf32, #tpu.memory_space<vmem>>, vector<32x1xf32>
    %2 = vector.extract_strided_slice %0 {offsets = [0, 0], sizes = [1, 512], strides = [1, 1]} : vector<2x512xf32> to vector<1x512xf32>
    %3 = vector.broadcast %1 : vector<32x1xf32> to vector<32x512xf32>
    %4 = vector.broadcast %2 : vector<1x512xf32> to vector<32x512xf32>
    %5 = arith.mulf %3, %4 : vector<32x512xf32>
    %c0_3 = arith.constant 0 : index
    %c1 = arith.constant 1 : index
    %6 = vector.load %arg2[%c0_3, %c1] : memref<32x2xf32, #tpu.memory_space<vmem>>, vector<32x1xf32>
    %7 = vector.extract_strided_slice %0 {offsets = [1, 0], sizes = [1, 512], strides = [1, 1]} : vector<2x512xf32> to vector<1x512xf32>
    %8 = vector.broadcast %6 : vector<32x1xf32> to vector<32x512xf32>
    %9 = vector.broadcast %7 : vector<1x512xf32> to vector<32x512xf32>
    %10 = arith.mulf %8, %9 : vector<32x512xf32>
    %11 = arith.addf %5, %10 : vector<32x512xf32>
    %c0_4 = arith.constant 0 : index
    %c0_5 = arith.constant 0 : index
    %12 = vector.load %arg3[%c0_4, %c0_5] : memref<32x1xf32, #tpu.memory_space<vmem>>, vector<32x1xf32>
    %13 = vector.broadcast %12 : vector<32x1xf32> to vector<32x512xf32>
    %14 = arith.addf %11, %13 : vector<32x512xf32>
    %15 = math.tanh %14 : vector<32x512xf32>
    %c0_6 = arith.constant 0 : index
    %c0_7 = arith.constant 0 : index
    %16 = vector.load %arg4[%c0_6, %c0_7] : memref<32x32xf32, #tpu.memory_space<vmem>>, vector<32x32xf32>
    %cst = arith.constant dense<0.000000e+00> : vector<32x512xf32>
    %17 = tpu.matmul %16, %15, %cst {dimension_numbers = #tpu.dot_dimension_numbers<[1], [0], [0], [1], [0, 0, 1, 1], [], []>} : vector<32x32xf32>, vector<32x512xf32>, vector<32x512xf32> -> vector<32x512xf32>
    %c0_8 = arith.constant 0 : index
    %c0_9 = arith.constant 0 : index
    %18 = vector.load %arg5[%c0_8, %c0_9] : memref<32x1xf32, #tpu.memory_space<vmem>>, vector<32x1xf32>
    %19 = vector.broadcast %18 : vector<32x1xf32> to vector<32x512xf32>
    %20 = arith.addf %17, %19 : vector<32x512xf32>
    %21 = math.tanh %20 : vector<32x512xf32>
    %c0_10 = arith.constant 0 : index
    %c0_11 = arith.constant 0 : index
    %22 = vector.load %arg6[%c0_10, %c0_11] : memref<32x1xf32, #tpu.memory_space<vmem>>, vector<32x1xf32>
    %23 = vector.broadcast %22 : vector<32x1xf32> to vector<32x512xf32>
    %24 = arith.mulf %23, %21 : vector<32x512xf32>
    %cst_12 = arith.constant dense<0.000000e+00> : vector<512xf32>
    %25 = vector.multi_reduction <add>, %24, %cst_12 [0] : vector<32x512xf32> to vector<512xf32>
    %26 = vector.shape_cast %25 : vector<512xf32> to vector<1x512xf32>
    %c0_13 = arith.constant 0 : index
    %c0_14 = arith.constant 0 : index
    %27 = memref.load %arg7[%c0_13, %c0_14] : memref<1x1xf32, #tpu.memory_space<smem>>
    %28 = vector.broadcast %27 : f32 to vector<1x512xf32>
    %29 = arith.addf %26, %28 : vector<1x512xf32>
    %30 = vector.extract_strided_slice %0 {offsets = [0, 0], sizes = [1, 512], strides = [1, 1]} : vector<2x512xf32> to vector<1x512xf32>
    %c0_15 = arith.constant 0 : index
    %c0_16 = arith.constant 0 : index
    %31 = memref.load %arg8[%c0_15, %c0_16] : memref<1x1xf32, #tpu.memory_space<smem>>
    %32 = arith.mulf %30, %29 : vector<1x512xf32>
    %33 = vector.broadcast %31 : f32 to vector<1x512xf32>
    %34 = arith.subf %33, %32 : vector<1x512xf32>
    %c0_17 = arith.constant 0 : index
    %c0_18 = arith.constant 0 : index
    %35 = vector.load %arg9[%c0_17, %c0_18] : memref<1x512xf32, #tpu.memory_space<vmem>>, vector<1x512xf32>
    tpu.vector_store %arg9[%c0_17, %c0_18], %34 {strides = array<i32>} : memref<1x512xf32, #tpu.memory_space<vmem>>, vector<1x512xf32>,
    return
  }
  func.func @transform_0(%arg0: i32) -> (i32, i32) {
    %c0_i32 = arith.constant 0 : i32
    %c0_i32_0 = arith.constant 0 : i32
    return %c0_i32, %arg0 : i32, i32
  }
  func.func @transform_1(%arg0: i32) -> (i32, i32) {
    %c0_i32 = arith.constant 0 : i32
    %c0_i32_0 = arith.constant 0 : i32
    %c0_i32_1 = arith.constant 0 : i32
    return %c0_i32, %c0_i32_0 : i32, i32
  }
  func.func @transform_2(%arg0: i32) -> (i32, i32) {
    %c0_i32 = arith.constant 0 : i32
    %c0_i32_0 = arith.constant 0 : i32
    %c0_i32_1 = arith.constant 0 : i32
    return %c0_i32, %c0_i32_0 : i32, i32
  }
  func.func @transform_3(%arg0: i32) -> (i32, i32) {
    %c0_i32 = arith.constant 0 : i32
    %c0_i32_0 = arith.constant 0 : i32
    %c0_i32_1 = arith.constant 0 : i32
    return %c0_i32, %c0_i32_0 : i32, i32
  }
  func.func @transform_4(%arg0: i32) -> (i32, i32) {
    %c0_i32 = arith.constant 0 : i32
    %c0_i32_0 = arith.constant 0 : i32
    %c0_i32_1 = arith.constant 0 : i32
    return %c0_i32, %c0_i32_0 : i32, i32
  }
  func.func @transform_5(%arg0: i32) -> (i32, i32) {
    %c0_i32 = arith.constant 0 : i32
    %c0_i32_0 = arith.constant 0 : i32
    %c0_i32_1 = arith.constant 0 : i32
    return %c0_i32, %c0_i32_0 : i32, i32
  }
  func.func @transform_6(%arg0: i32) -> (i32, i32) {
    %c0_i32 = arith.constant 0 : i32
    %c0_i32_0 = arith.constant 0 : i32
    %c0_i32_1 = arith.constant 0 : i32
    return %c0_i32, %c0_i32_0 : i32, i32
  }
  func.func @transform_7(%arg0: i32) -> (i32, i32) {
    %c0_i32 = arith.constant 0 : i32
    %c0_i32_0 = arith.constant 0 : i32
    %c0_i32_1 = arith.constant 0 : i32
    return %c0_i32, %c0_i32_0 : i32, i32
  }
  func.func @transform_8(%arg0: i32) -> (i32, i32) {
    %c0_i32 = arith.constant 0 : i32
    %c0_i32_0 = arith.constant 0 : i32
    return %c0_i32, %arg0 : i32, i32
  }
}

</mosaic_0001>

<bundles_post_ra>
// kernel: tpu_custom_call.1
= control target key start
LH: loop header
LB: loop body
LE: loop exit
PB: predicated region body
PF: predicated region fallthrough
CT: control target
= control target key end

     0   :  { %s1305_s0 = inlined_call_operand.vmem [shape: f32[2,2048], index: 0, kind: input, shape index: {}]   ;;  %s1306_s1 = inlined_call_operand.vmem [shape: f32[32,2], index: 1, kind: input, shape index: {}]   ;;  %s1307_s2 = inlined_call_operand.vmem [shape: f32[32,1], index: 2, kind: input, shape index: {}]   ;;  %s1308_s3 = inlined_call_operand.vmem [shape: f32[32,32], index: 3, kind: input, shape index: {}]   ;;  %s1309_s4 = inlined_call_operand.vmem [shape: f32[32,1], index: 4, kind: input, shape index: {}]   ;;  %s1310_s5 = inlined_call_operand.vmem [shape: f32[32,1], index: 5, kind: input, shape index: {}]   ;;  %s1311_s6 = inlined_call_operand.<no memory space> [shape: f32[1,1], index: 6, kind: input, shape index: {}]   ;;  %s1312_s7 = inlined_call_operand.<no memory space> [shape: f32[1,1], index: 7, kind: input, shape index: {}]   ;;  %s1313_s8 = inlined_call_operand.hbm [shape: f32[1,2048], index: 8, kind: output, shape index: {}]  }
   0x1   :  { %13 = sst [smem:[#allocation2]] %s1311_s6 }
   0x2   :  { %14 = sst [smem:[#allocation3]] %s1312_s7 }
   0x3   :  { %15 = vsyncpa [#allocation5], 0 }
   0x4   :  { %17 = vsyncpa [#allocation5 + $0x1], 0  ;;  %s1100_s9 = smov 0   ;;  %s1102_s10 = smov 0  }
   0x5   :  { %s1104_s11 = smov 0   ;;  %s1106_s12 = smov 0  }
   0x6 LB: > { %s841_s6 = sadd.s32 4294967295, %s1045_s12   ;;  %s842_s7 = sadd.s32 4294967294, %s1045_s12   ;;  %s1045_s12 = sphi %s1106_s12, %s1319_s12   ;;  %s1041_s11 = sphi %s1104_s11, %s1318_s11   ;;  %s1037_s10 = sphi %s1102_s10, %s1317_s10   ;;  %s1033_s9 = sphi %s1100_s9, %s1316_s9  }
   0x7   : > { %s1123_s13 = sadd.s32 1, %s1045_s12   ;;  %s203_s14 = sadd.s32 1, %s1041_s11 }
   0x8   : > { %s200_s15 = ssub.s32 %s1045_s12, %s1123_s13  ;;  %p213_p0 = scmp.ne.s32.totalorder %s1041_s11, %s1037_s10 }
   0x9   : > { %p201_p1 = scmp.eq.s32.totalorder %s200_s15, 0  ;;  %p214_p2 = scmp.eq.s32.totalorder %s841_s6, 3 }
   0xa   : > { %p219_p3 = scmp.ne.s32.totalorder %s1037_s10, %s1033_s9  ;;  %p220_p4 = scmp.eq.s32.totalorder %s842_s7, 3 }
   0xb   : > { %s1135_s16 = scalar_select %p201_p1, %s1041_s11, %s203_s14  }
   0xc   : > { %p1137_p5 = por %p214_p2, %p213_p0  ;;  %p1141_p6 = por %p220_p4, %p219_p3 }
   0xd   : > { %p845_p7 = scmp.ge.s32.totalorder %s1045_s12, 1  ;;  %p268_p8 = scmp.lt.s32.totalorder %s1045_s12, 5 }
   0xf   : > { %p269_p9 = pnand %p845_p7, %p268_p8 }
  0x10   : > { %s1197_s21 = sshll.u32 (!%p269_p9), %s841_s6, 2  ;;  %s728_s19 = sld [smem:[#allocation2]] (!%p269_p9) }
  0x11   : > { %272 = sbr.rel (%p269_p9) target bundleno = 382 (0x17e), region = 52  ;;  %p303_p10 = scmp.lt.s32.totalorder (!%p269_p9), %s1197_s21, 15 }
  0x12   : > { %s734_s20 = sld [smem:[#allocation3]] (!%p269_p9)  ;;  %s1003_s15 = scalar_lea.hbm (!%p269_p9), %s1313_s8, 16 }
  0x16   : > { %v313_v0 = vld [vmem:[%s1306_s1 + $0x18] sm:$0xff]  ;;  %v312_v1 = vld [vmem:[%s1306_s1 + $0x10] sm:$0xff]  ;;  %v311_v2 = vld [vmem:[%s1306_s1 + $0x8] sm:$0xff]  ;;  %v1047_v3 = vmov 0   ;;  %v1048_v4 = vmov 1   ;;  %s304_s22 = scalar_select %p303_p10, %s1197_s21, 15 }
  0x17   : > { %914 = vset.pattern.permute.xlu2 %v1047_v3  ;;  %912 = vset.pattern.permute.xlu1 %v1047_v3  ;;  %v310_v5 = vld [vmem:[%s1306_s1] sm:$0xff]  ;;  %v426_v6 = vld [vmem:[%s1307_s2 + $0x18] sm:$0xff]  ;;  %v425_v7 = vld [vmem:[%s1307_s2 + $0x10] sm:$0xff]  ;;  %vm507_vm0 = vcmask 261120   ;;  %vm742_vm1 = vcmask 1041408   ;;  %vm744_vm2 = vcmask 1045508  }
  0x18   : > { %910 = vset.pattern.permute.xlu0 %v1047_v3  ;;  %326 = vperm.xlu1 %912, %v312_v1   ;;  %v423_v8 = vld [vmem:[%s1307_s2] sm:$0xff]  ;;  %v424_v9 = vld [vmem:[%s1307_s2 + $0x8] sm:$0xff]  ;;  %v485_v13 = vld [vmem:[%s1309_s4 + $0x10] sm:$0xff]  ;;  %s848_s23 = sshll.u32 %s304_s22, 1  ;;  %s299_s22 = sand.u32 1, %s1037_s10   ;;  %vm746_vm3 = vcmask 1043456  }
  0x19   : > { %331 = vperm.xlu0 %910, %v313_v0   ;;  %321 = vperm.xlu2 %914, %v311_v2   ;;  %v483_v10 = vld [vmem:[%s1309_s4] sm:$0xff]  ;;  %v484_v12 = vld [vmem:[%s1309_s4 + $0x8] sm:$0xff]  ;;  %v655_v14 = vld [vmem:[%s1310_s5 + $0x18] sm:$0xff]  ;;  %s306_s26 = scalar_lea.vmem %s1305_s0, %s848_s23  ;;  %s846_s23 = sshll.u32 %s299_s22, 2  ;;  %vm756_vm4 = vcmask 1040384   ;;  %vm758_vm5 = vcmask 1042434  }
  0x1a   : > { %v652_v11 = vld [vmem:[%s1310_s5] sm:$0xff]  ;;  %v486_v15 = vld [vmem:[%s1309_s4 + $0x18] sm:$0xff]  ;;  %v653_v16 = vld [vmem:[%s1310_s5 + $0x8] sm:$0xff]  ;;  %s301_s6 = scalar_lea.vmem [#allocation4], %s846_s23 }
  0x1b   : > { %v654_v17 = vld [vmem:[%s1310_s5 + $0x10] sm:$0xff]  ;;  %v1204_v20 = vld [vmem:[%s306_s26] sm:$0xff]  ;;  %s778_s26 = scalar_lea.hbm %s1313_s8, %s1197_s21  ;;  %s780_s27 = sshll.u32 %s301_s6, 4  ;;  %s781_s27 = int_to_ptr.vmem [resolvable:$true] %s780_s27 }
  0x1c   : > { %v379_v21 = vperm.slane %v1204_v20, 1  ;;  %v380_v23 = vperm.slane %v1204_v20, 3  ;;  %v335_v25 = vperm.slane %v1204_v20, 0  ;;  %v336_v26 = vperm.slane %v1204_v20, 2  ;;  %s782_s28 = sshll.u32 %s778_s26, 4  ;;  %s768_s21 = scalar_lea.sflag [#allocation5], %s299_s22  ;;  %s783_s28 = int_to_ptr.hbm [resolvable:$true] %s782_s28 }
  0x1d   : > { %v381_v32 = vperm.slane %v1204_v20, 5  ;;  %v382_v33 = vperm.slane %v1204_v20, 7  ;;  %v337_v34 = vperm.slane %v1204_v20, 4  ;;  %v338_v37 = vperm.slane %v1204_v20, 6  ;;  %s997_s29 = sshra.s32 %s783_s28, 4  ;;  %s998_s29 = int_to_ptr.hbm [resolvable:$true] %s997_s29 }
  0x1e   : > { %v1212_v27 = vperm.slane %v379_v21, 1  ;;  %v1214_v28 = vperm.slane %v380_v23, 1  ;;  %v343_v30 = vperm.slane %v335_v25, 0  ;;  %v344_v31 = vperm.slane %v336_v26, 0  ;;  %s999_s30 = scalar_lea.hbm %s998_s29, 4  ;;  %p1004_p0 = scmp.lt.s32.totalorder %s998_s29, %s1313_s8 }
  0x1f   : > { %v389_v42 = vperm.slane %v381_v32, 1  ;;  %v390_v43 = vperm.slane %v382_v33, 1  ;;  %v345_v44 = vperm.slane %v337_v34, 0  ;;  %v346_v46 = vperm.slane %v338_v37, 0  ;;  %p1000_p11 = scmp.ne.s32.totalorder %s998_s29, %s999_s30  ;;  %p1005_p1 = scmp.lt.s32.totalorder %s1003_s15, %s999_s30 }
  0x20   : > { %913 = vset.pattern.permute.xlu1 %v1048_v4 }
  0x21   : > { %911 = vset.pattern.permute.xlu0 %v1048_v4  ;;  %915 = vset.pattern.permute.xlu2 %v1048_v4  ;;  %p1001_p12 = pnand %p1000_p11, %p1137_p5  ;;  %p1006_p2 = por %p1005_p1, %p1004_p0 }
  0x22   : > { %376 = vperm.xlu0 %911, %v313_v0   ;;  %372 = vperm.xlu1 %913, %v312_v1  }
  0x23   : > { %368 = vperm.xlu2 %915, %v311_v2   ;;  %p1002_p13 = pneg %p1001_p12 }
  0x25   : > { %p1007_p3 = pnand %p1006_p2, %p1002_p13 }
  0x2a   : > { %916 = vset.pattern.permute.xlu1 %v1047_v3  ;;  %364 = vperm.xlu0 %911, %v310_v5  }
  0x2b   : > { %917 = vset.pattern.permute.xlu2 %v1047_v3  ;;  %444 = vperm.xlu1 %916, %v426_v6  }
  0x2c   : > { %316 = vperm.xlu2 %917, %v310_v5  }
  0x32   : > { %918 = vset.pattern.permute.xlu0 %v1047_v3 }
  0x33   : > { %439 = vperm.xlu1 %916, %v425_v7   ;;  %429 = vperm.xlu0 %918, %v423_v8  }
  0x34   : > { %434 = vperm.xlu2 %917, %v424_v9  }
  0x3b   : > { %489 = vperm.xlu1 %916, %v483_v10   ;;  %658 = vperm.xlu0 %918, %v652_v11  }
  0x3c   : > { %494 = vperm.xlu2 %917, %v484_v12  }
  0x43   : > { %499 = vperm.xlu1 %916, %v485_v13   ;;  %673 = vperm.xlu0 %918, %v655_v14  }
  0x44   : > { %504 = vperm.xlu2 %917, %v486_v15  }
  0x4b   : > { %663 = vperm.xlu1 %916, %v653_v16  }
  0x4c   : > { %668 = vperm.xlu2 %917, %v654_v17  }
  0x73   : > { %v322_v18 = vpop.permute.xlu2 %321 }
  0x74   : > { %v351_v35 = vmul.f32 %v343_v30, %v322_v18  ;;  %v352_v38 = vmul.f32 %v344_v31, %v322_v18  ;;  %v353_v48 = vmul.f32 %v345_v44, %v322_v18  ;;  %v354_v52 = vmul.f32 %v346_v46, %v322_v18 }
  0x7d   : > { %v369_v19 = vpop.permute.xlu2 %368 }
  0x7e   : > { %v395_v36 = vmul.f32 %v1212_v27, %v369_v19  ;;  %v396_v39 = vmul.f32 %v1214_v28, %v369_v19  ;;  %v397_v53 = vmul.f32 %v389_v42, %v369_v19  ;;  %v398_v54 = vmul.f32 %v390_v43, %v369_v19 }
  0x80   : > { %v411_v45 = vadd.f32 %v395_v36, %v351_v35  ;;  %v412_v47 = vadd.f32 %v396_v39, %v352_v38  ;;  %v413_v4 = vadd.f32 %v397_v53, %v353_v48  ;;  %v414_v5 = vadd.f32 %v398_v54, %v354_v52 }
  0x86   : > { %v1216_v29 = vpop.permute.xlu2 %316 }
  0x87   : > { %v347_v3 = vmul.f32 %v343_v30, %v1216_v29  ;;  %v348_v11 = vmul.f32 %v344_v31, %v1216_v29  ;;  %v349_v12 = vmul.f32 %v345_v44, %v1216_v29  ;;  %v350_v38 = vmul.f32 %v346_v46, %v1216_v29 }
  0x8a   : > { %v1207_v22 = vpop.permute.xlu1 %326 }
  0x8b   : > { %v332_v24 = vpop.permute.xlu0 %331  ;;  %v355_v17 = vmul.f32 %v343_v30, %v1207_v22  ;;  %v356_v21 = vmul.f32 %v344_v31, %v1207_v22  ;;  %v357_v23 = vmul.f32 %v345_v44, %v1207_v22  ;;  %v358_v25 = vmul.f32 %v346_v46, %v1207_v22 }
  0x8c   : > { %v359_v58 = vmul.f32 %v343_v30, %v332_v24  ;;  %v360_v59 = vmul.f32 %v344_v31, %v332_v24  ;;  %v361_v60 = vmul.f32 %v345_v44, %v332_v24  ;;  %v362_v62 = vmul.f32 %v346_v46, %v332_v24 }
  0x8e   : > { %v435_v55 = vpop.permute.xlu2 %434 }
  0x8f   : > { %v451_v57 = vadd.f32 %v435_v55, %v411_v45  ;;  %v452_v61 = vadd.f32 %v435_v55, %v412_v47  ;;  %v453_v18 = vadd.f32 %v435_v55, %v413_v4  ;;  %v454_v26 = vadd.f32 %v435_v55, %v414_v5 }
  0x91   : > { %919 = vtanh.f32 %v451_v57 }
  0x92   : > { %921 = vtanh.f32 %v452_v61  ;;  %v479_v61 = vld [vmem:[%s1308_s3] sm:$0xff] }
  0x94   : > { %v377_v40 = vpop.permute.xlu0 %376  ;;  %v373_v41 = vpop.permute.xlu1 %372 }
  0x95   : > { %v403_v49 = vmul.f32 %v1212_v27, %v377_v40  ;;  %v404_v50 = vmul.f32 %v1214_v28, %v377_v40  ;;  %v405_v51 = vmul.f32 %v389_v42, %v377_v40  ;;  %v406_v56 = vmul.f32 %v390_v43, %v377_v40 }
  0x96   : > { %v399_v14 = vmul.f32 %v1212_v27, %v373_v41  ;;  %v400_v15 = vmul.f32 %v1214_v28, %v373_v41  ;;  %v401_v16 = vmul.f32 %v389_v42, %v373_v41  ;;  %v402_v19 = vmul.f32 %v390_v43, %v373_v41 }
  0x97   : > { %v419_v0 = vadd.f32 %v403_v49, %v359_v58  ;;  %v420_v1 = vadd.f32 %v404_v50, %v360_v59  ;;  %v421_v2 = vadd.f32 %v405_v51, %v361_v60  ;;  %v422_v7 = vadd.f32 %v406_v56, %v362_v62  ;;  %v920_v33 = vpop.eup %919 }
  0x98   : > { %v415_v35 = vadd.f32 %v399_v14, %v355_v17  ;;  %v416_v30 = vadd.f32 %v400_v15, %v356_v21  ;;  %v417_v36 = vadd.f32 %v401_v16, %v357_v23  ;;  %v922_v37 = vpop.eup %921  ;;  %v418_v40 = vadd.f32 %v402_v19, %v358_v25 }
  0x9c   : > { %v365_v63 = vpop.permute.xlu0 %364 }
  0x9d   : > { %v445_v6 = vpop.permute.xlu1 %444  ;;  %v391_v24 = vmul.f32 %v1212_v27, %v365_v63  ;;  %v392_v32 = vmul.f32 %v1214_v28, %v365_v63  ;;  %v393_v34 = vmul.f32 %v389_v42, %v365_v63  ;;  %v394_v31 = vmul.f32 %v390_v43, %v365_v63 }
  0x9e   : > { %v459_v8 = vadd.f32 %v445_v6, %v419_v0  ;;  %v460_v9 = vadd.f32 %v445_v6, %v420_v1  ;;  %v461_v10 = vadd.f32 %v445_v6, %v421_v2  ;;  %v462_v13 = vadd.f32 %v445_v6, %v422_v7  ;;  %v480_v1 = vld [vmem:[%s1308_s3 + $0x8] sm:$0xff]  ;;  %v481_v2 = vld [vmem:[%s1308_s3 + $0x10] sm:$0xff] }
  0x9f   : > { %v407_v47 = vadd.f32 %v391_v24, %v347_v3  ;;  %v408_v42 = vadd.f32 %v392_v32, %v348_v11  ;;  %v409_v50 = vadd.f32 %v393_v34, %v349_v12  ;;  %v410_v43 = vadd.f32 %v394_v31, %v350_v38  ;;  %v482_v3 = vld [vmem:[%s1308_s3 + $0x18] sm:$0xff]  ;;  %v495_v11 = vpop.permute.xlu2 %494 }
  0xa0   : > { %923 = vtanh.f32 %v459_v8 }
  0xa1   : > { %925 = vtanh.f32 %v460_v9 }
  0xa2   : > { %927 = vtanh.f32 %v461_v10 }
  0xa3   : > { %929 = vtanh.f32 %v462_v13 }
  0xa4   : > { %931 = vtanh.f32 %v453_v18 }
  0xa5   : > { %v440_v39 = vpop.permute.xlu1 %439  ;;  %v430_v27 = vpop.permute.xlu0 %429  ;;  %933 = vtanh.f32 %v454_v26 }
  0xa6   : > { %v924_v41 = vpop.eup %923  ;;  %v455_v44 = vadd.f32 %v440_v39, %v415_v35  ;;  %v456_v22 = vadd.f32 %v440_v39, %v416_v30  ;;  %v457_v45 = vadd.f32 %v440_v39, %v417_v36  ;;  %v458_v48 = vadd.f32 %v440_v39, %v418_v40 }
  0xa7   : > { %v926_v28 = vpop.eup %925  ;;  %532 = vmatpush.msra.mxu0 %v924_v41  ;;  %v447_v51 = vadd.f32 %v430_v27, %v407_v47  ;;  %v448_v46 = vadd.f32 %v430_v27, %v408_v42  ;;  %v449_v52 = vadd.f32 %v430_v27, %v409_v50  ;;  %v450_v54 = vadd.f32 %v430_v27, %v410_v43  ;;  %v505_v32 = vpop.permute.xlu2 %504 }
  0xa8   : > { %v928_v49 = vpop.eup %927  ;;  %935 = vtanh.f32 %v455_v44  ;;  %561 = vmatpush.msra.mxu1 %v926_v28 }
  0xa9   : > { %v930_v29 = vpop.eup %929  ;;  %937 = vtanh.f32 %v456_v22  ;;  %590 = vmatpush.msra.mxu2 %v928_v49 }
  0xaa   : > { %939 = vtanh.f32 %v457_v45  ;;  %619 = vmatpush.msra.mxu3 %v930_v29  ;;  %v932_v53 = vpop.eup %931 }
  0xab   : > { %941 = vtanh.f32 %v458_v48  ;;  %v934_v55 = vpop.eup %933 }
  0xac   : > { %943 = vtanh.f32 %v447_v51 }
  0xad   : > { %945 = vtanh.f32 %v448_v46  ;;  %v490_v6 = vpop.permute.xlu1 %489  ;;  %v659_v30 = vpop.permute.xlu0 %658 }
  0xae   : > { %v936_v56 = vpop.eup %935  ;;  %947 = vtanh.f32 %v449_v52 }
  0xaf   : > { %v938_v57 = vpop.eup %937  ;;  %949 = vtanh.f32 %v450_v54  ;;  %533 = vmatpush.msra.mxu0 %v936_v56  ;;  %v669_v29 = vpop.permute.xlu2 %668 }
  0xb0   : > { %v940_v58 = vpop.eup %939  ;;  %562 = vmatpush.msra.mxu1 %v938_v57 }
  0xb1   : > { %v942_v59 = vpop.eup %941  ;;  %591 = vmatpush.msra.mxu2 %v940_v58  ;;  %534 = vmatpush.msra.mxu0 %v920_v33 }
  0xb2   : > { %v944_v60 = vpop.eup %943  ;;  %620 = vmatpush.msra.mxu3 %v942_v59  ;;  %563 = vmatpush.msra.mxu1 %v922_v37 }
  0xb3   : > { %v946_v62 = vpop.eup %945  ;;  %592 = vmatpush.msra.mxu2 %v932_v53  ;;  %535 = vmatpush.msra.mxu0 %v944_v60 }
  0xb4   : > { %v948_v63 = vpop.eup %947  ;;  %621 = vmatpush.msra.mxu3 %v934_v55  ;;  %564 = vmatpush.msra.mxu1 %v946_v62 }
  0xb5   : > { %v950_v0 = vpop.eup %949  ;;  %593 = vmatpush.msra.mxu2 %v948_v63  ;;  %849 = vmatmul.msk.f32.vlgmr.msra.gmra.mxu0 %vm507_vm0, %v479_v61  ;;  %v500_v23 = vpop.permute.xlu1 %499 }
  0xb6   : > { %622 = vmatpush.msra.mxu3 %v950_v0  ;;  %853 = vmatmul.msk.f32.vlgmr.msra.gmra.mxu1 %vm507_vm0, %v479_v61  ;;  %v674_v0 = vpop.permute.xlu0 %673 }
  0xb7   : > { %857 = vmatmul.msk.f32.vlgmr.msra.gmra.mxu2 %vm507_vm0, %v479_v61  ;;  %861 = vmatmul.msk.f32.vlgmr.msra.gmra.mxu3 %vm507_vm0, %v479_v61 }
  0xbd   : > { %850 = vmatmul.msk.f32.gmra.mxu0 %vm507_vm0, %v480_v1  ;;  %v664_v42 = vpop.permute.xlu1 %663 }
  0xbe   : > { %854 = vmatmul.msk.f32.gmra.mxu1 %vm507_vm0, %v480_v1 }
  0xbf   : > { %858 = vmatmul.msk.f32.gmra.mxu2 %vm507_vm0, %v480_v1  ;;  %862 = vmatmul.msk.f32.gmra.mxu3 %vm507_vm0, %v480_v1 }
  0xc5   : > { %851 = vmatmul.msk.f32.gmra.mxu0 %vm507_vm0, %v481_v2 }
  0xc6   : > { %855 = vmatmul.msk.f32.gmra.mxu1 %vm507_vm0, %v481_v2 }
  0xc7   : > { %859 = vmatmul.msk.f32.gmra.mxu2 %vm507_vm0, %v481_v2  ;;  %863 = vmatmul.msk.f32.gmra.mxu3 %vm507_vm0, %v481_v2 }
  0xcd   : > { %852 = vmatmul.msk.f32.gmra.mxu0 %vm507_vm0, %v482_v3 }
  0xce   : > { %856 = vmatmul.msk.f32.gmra.mxu1 %vm507_vm0, %v482_v3 }
  0xcf   : > { %860 = vmatmul.msk.f32.gmra.mxu2 %vm507_vm0, %v482_v3  ;;  %864 = vmatmul.msk.f32.gmra.mxu3 %vm507_vm0, %v482_v3 }
 0x132   : > { %v537_v4 = vpop.f32.mrf.mxu0 }
 0x133   : > { %v566_v5 = vpop.f32.mrf.mxu1  ;;  %v538_v12 = vadd.f32 %v537_v4, %v490_v6 }
 0x134   : > { %v567_v13 = vadd.f32 %v566_v5, %v490_v6 }
 0x135   : > { %951 = vtanh.f32 %v538_v12 }
 0x136   : > { %953 = vtanh.f32 %v567_v13 }
 0x13a   : > { %v595_v7 = vpop.f32.mrf.mxu2  ;;  %v624_v8 = vpop.f32.mrf.mxu3 }
 0x13b   : > { %v540_v9 = vpop.f32.mrf.mxu0  ;;  %v569_v10 = vpop.f32.mrf.mxu1  ;;  %v596_v14 = vadd.f32 %v595_v7, %v490_v6  ;;  %v625_v15 = vadd.f32 %v624_v8, %v490_v6 }
 0x13c   : > { %v541_v18 = vadd.f32 %v540_v9, %v495_v11  ;;  %v570_v24 = vadd.f32 %v569_v10, %v495_v11  ;;  %v952_v35 = vpop.eup %951 }
 0x13d   : > { %955 = vtanh.f32 %v596_v14  ;;  %v954_v36 = vpop.eup %953  ;;  %v676_v52 = vmul.f32 %v952_v35, %v659_v30 }
 0x13e   : > { %957 = vtanh.f32 %v625_v15  ;;  %v677_v57 = vmul.f32 %v954_v36, %v659_v30 }
 0x13f   : > { %959 = vtanh.f32 %v541_v18 }
 0x140   : > { %961 = vtanh.f32 %v570_v24 }
 0x142   : > { %v598_v16 = vpop.f32.mrf.mxu2  ;;  %v627_v17 = vpop.f32.mrf.mxu3 }
 0x143   : > { %v543_v19 = vpop.f32.mrf.mxu0  ;;  %v572_v21 = vpop.f32.mrf.mxu1  ;;  %v599_v33 = vadd.f32 %v598_v16, %v495_v11  ;;  %v628_v34 = vadd.f32 %v627_v17, %v495_v11 }
 0x144   : > { %v544_v25 = vadd.f32 %v543_v19, %v500_v23  ;;  %v573_v26 = vadd.f32 %v572_v21, %v500_v23  ;;  %v956_v31 = vpop.eup %955 }
 0x145   : > { %v958_v44 = vpop.eup %957  ;;  %v678_v9 = vmul.f32 %v956_v31, %v659_v30 }
 0x146   : > { %963 = vtanh.f32 %v544_v25  ;;  %v960_v47 = vpop.eup %959  ;;  %v679_v12 = vmul.f32 %v958_v44, %v659_v30 }
 0x147   : > { %965 = vtanh.f32 %v573_v26  ;;  %v962_v28 = vpop.eup %961  ;;  %v680_v50 = vmul.f32 %v960_v47, %v664_v42 }
 0x148   : > { %967 = vtanh.f32 %v599_v33  ;;  %v681_v43 = vmul.f32 %v962_v28, %v664_v42  ;;  %v729_v28 = vstv %s728_s19 }
 0x149   : > { %969 = vtanh.f32 %v628_v34  ;;  %v692_v62 = vadd.f32 %v680_v50, %v676_v52 }
 0x14a   : > { %v601_v37 = vpop.f32.mrf.mxu2  ;;  %v630_v38 = vpop.f32.mrf.mxu3  ;;  %v701_v1 = vadd.f32 %v681_v43, %v677_v57 }
 0x14b   : > { %v602_v39 = vadd.f32 %v601_v37, %v500_v23  ;;  %v631_v40 = vadd.f32 %v630_v38, %v500_v23  ;;  %v546_v27 = vpop.f32.mrf.mxu0  ;;  %v575_v41 = vpop.f32.mrf.mxu1 }
 0x14c   : > { %v547_v22 = vadd.f32 %v546_v27, %v505_v32  ;;  %v576_v45 = vadd.f32 %v575_v41, %v505_v32  ;;  %v964_v48 = vpop.eup %963 }
 0x14d   : > { %971 = vtanh.f32 %v602_v39  ;;  %v966_v49 = vpop.eup %965  ;;  %v684_v53 = vmul.f32 %v964_v48, %v669_v29 }
 0x14e   : > { %973 = vtanh.f32 %v631_v40  ;;  %v968_v51 = vpop.eup %967  ;;  %v685_v58 = vmul.f32 %v966_v49, %v669_v29 }
 0x14f   : > { %975 = vtanh.f32 %v547_v22  ;;  %v970_v46 = vpop.eup %969  ;;  %v682_v3 = vmul.f32 %v968_v51, %v664_v42  ;;  %v693_v4 = vadd.f32 %v692_v62, %v684_v53 }
 0x150   : > { %977 = vtanh.f32 %v576_v45  ;;  %v683_v6 = vmul.f32 %v970_v46, %v664_v42  ;;  %v702_v7 = vadd.f32 %v701_v1, %v685_v58 }
 0x151   : > { %v710_v15 = vadd.f32 %v682_v3, %v678_v9 }
 0x152   : > { %v604_v54 = vpop.f32.mrf.mxu2  ;;  %v633_v55 = vpop.f32.mrf.mxu3  ;;  %v719_v18 = vadd.f32 %v683_v6, %v679_v12 }
 0x153   : > { %v972_v56 = vpop.eup %971  ;;  %v605_v59 = vadd.f32 %v604_v54, %v505_v32  ;;  %v634_v60 = vadd.f32 %v633_v55, %v505_v32 }
 0x154   : > { %v974_v61 = vpop.eup %973  ;;  %v686_v10 = vmul.f32 %v972_v56, %v669_v29 }
 0x155   : > { %v976_v63 = vpop.eup %975  ;;  %979 = vtanh.f32 %v605_v59  ;;  %v687_v13 = vmul.f32 %v974_v61, %v669_v29  ;;  %v750_v61 = vstv %s734_s20 }
 0x156   : > { %v978_v2 = vpop.eup %977  ;;  %v688_v5 = vmul.f32 %v976_v63, %v674_v0  ;;  %981 = vtanh.f32 %v634_v60  ;;  %v711_v23 = vadd.f32 %v710_v15, %v686_v10  ;;  %v762_v63 = vlaneseq }
 0x157   : > { %v689_v8 = vmul.f32 %v978_v2, %v674_v0  ;;  %v720_v26 = vadd.f32 %v719_v18, %v687_v13 }
 0x158   : > { %v694_v11 = vadd.f32 %v693_v4, %v688_v5  ;;  %vm764_vm6 = vcmp.lt.s32.totalorder %v762_v63, 512 }
 0x159   : > { %v703_v14 = vadd.f32 %v702_v7, %v689_v8 }
 0x15a   : > { %v695_v16 = vrot.slane %v694_v11, 4 }
 0x15b   : > { %v980_v17 = vpop.eup %979  ;;  %v704_v19 = vrot.slane %v703_v14, 4 }
 0x15c   : > { %v982_v21 = vpop.eup %981  ;;  %v696_v24 = vadd.f32 %v695_v16, %v694_v11  ;;  %v690_v25 = vmul.f32 %v980_v17, %v674_v0 }
 0x15d   : > { %v705_v32 = vadd.f32 %v704_v19, %v703_v14  ;;  %v691_v33 = vmul.f32 %v982_v21, %v674_v0 }
 0x15e   : > { %v712_v34 = vadd.f32 %v711_v23, %v690_v25  ;;  %v697_v35 = vrot.slane %v696_v24, 2 }
 0x15f   : > { %v706_v36 = vrot.slane %v705_v32, 2  ;;  %v721_v37 = vadd.f32 %v720_v26, %v691_v33 }
 0x160   : > { %v713_v30 = vrot.slane %v712_v34, 4  ;;  %v698_v40 = vadd.f32 %v697_v35, %v696_v24 }
 0x161   : > { %v707_v38 = vadd.f32 %v706_v36, %v705_v32  ;;  %v722_v31 = vrot.slane %v721_v37, 4 }
 0x162   : > { %v714_v39 = vadd.f32 %v713_v30, %v712_v34  ;;  %v699_v48 = vrot.slane %v698_v40, 1 }
 0x163   : > { %v708_v27 = vrot.slane %v707_v38, 1  ;;  %v723_v41 = vadd.f32 %v722_v31, %v721_v37 }
 0x164   : > { %v715_v44 = vrot.slane %v714_v39, 2  ;;  %v700_v43 = vadd.f32 %v699_v48, %v698_v40 }
 0x165   : > { %v709_v22 = vadd.f32 %v708_v27, %v707_v38  ;;  %v724_v45 = vrot.slane %v723_v41, 2 }
 0x166   : > { %v716_v47 = vadd.f32 %v715_v44, %v714_v39  ;;  %v730_v57 = vadd.f32 %v729_v28, %v700_v43 }
 0x167   : > { %v725_v42 = vadd.f32 %v724_v45, %v723_v41  ;;  %v731_v51 = vadd.f32 %v729_v28, %v709_v22 }
 0x168   : > { %v717_v49 = vrot.slane %v716_v47, 1 }
 0x169   : > { %v726_v50 = vrot.slane %v725_v42, 1  ;;  %v739_v54 = vrot.slane %v731_v51, 6 }
 0x16a   : > { %v718_v29 = vadd.f32 %v717_v49, %v716_v47 }
 0x16b   : > { %v727_v46 = vadd.f32 %v726_v50, %v725_v42  ;;  %v743_v58 = vsel %vm742_vm1, %v730_v57, %v739_v54 }
 0x16c   : > { %v732_v52 = vadd.f32 %v729_v28, %v718_v29 }
 0x16d   : > { %v733_v53 = vadd.f32 %v729_v28, %v727_v46 }
 0x16e   : > { %v740_v55 = vrot.slane %v732_v52, 4 }
 0x16f   : > { %v741_v56 = vrot.slane %v733_v53, 2 }
 0x171   : > { %v745_v59 = vsel %vm744_vm2, %v740_v55, %v741_v56 }
 0x172   : > { %v747_v60 = vsel %vm746_vm3, %v743_v58, %v745_v59 }
 0x173   : > { %v749_v62 = vmul.f32 %v747_v60, %v1204_v20 }
 0x175   : > { %v751_v0 = vsub.f32 %v750_v61, %v749_v62 }
 0x177   : > { %v753_v1 = vrot.slane %v751_v0, 1  ;;  %v754_v2 = vrot.slane %v751_v0, 2  ;;  %v755_v3 = vrot.slane %v751_v0, 3 }
 0x179   : > { %v757_v4 = vsel %vm756_vm4, %v751_v0, %v753_v1  ;;  %v759_v5 = vsel %vm758_vm5, %v754_v2, %v755_v3 }
 0x17a   : > { %v760_v20 = vsel %vm742_vm1, %v757_v4, %v759_v5 }
 0x17b   : > { %766 = vst.msk [vmem:[%s301_s6] sm:$0xf] %vm764_vm6, %v760_v20 }
 0x17c   : > { %1010 = shalt.err (!%p1007_p3)
}
 0x17d   : > { %869 = dma.vmem_to_hbm [thread:$0]  (%p1137_p5), %s781_s27, 64, %s783_s28, %s768_s21  }
 0x17e PF: > { %p875_p4 = scmp.ge.s32.totalorder %s1045_s12, 2  ;;  %s794_s22 = sand.u32 1, %s1033_s9  }
 0x17f   : > { %s795_s23 = scalar_lea.sflag [#allocation5], %s794_s22 }
 0x180   : > { %p872_p7 = pnand %p875_p4, %p1141_p6 }
 0x182   : > { %p873_p8 = pneg %p872_p7 }
 0x184   : > { %1028 = dma.done.wait (%p873_p8), %s795_s23, 64  }
 0x185   : > { %1030 = vsyncadd (%p873_p8), %s795_s23, 4294967232  ;;  %p20_p9 = scmp.ge.s32.totalorder %s1123_s13, 6   ;;  %s1316_s9 = smov %s1037_s10 }
 0x186   : > { %s1317_s10 = smov %s1041_s11  ;;  %s1318_s11 = smov %s1135_s16 }
 0x187   : > { %s1319_s12 = smov %s1123_s13  ;;  %22 = sbr.rel (!%p20_p9) target bundleno = 6 (0x6), region = 87 }
 0x18c   :  { %801 = vsyncpa [#allocation5], 1 }
 0x18d   :  { %803 = vsyncpa [#allocation5 + $0x1], 1 }

</bundles_post_ra>
